<compile_context>
chip_gen: v7x
topology: tpu7x:2x2x1
jax: 0.10.0
libtpu: 0.0.40
codegen_flags: <defaults>
</compile_context>

<pallas_src>
import functools

import numpy as np

import jax
import jax.numpy as jnp
from jax import lax
from jax.experimental import pallas as pl
from jax.experimental.pallas import tpu as pltpu


def _inv_pixel_shuffle_kernel(x_ref, s_ref, o_ref, *, ratio, width, wc_full,
                              col_tiles, rows):
    """Processes `rows` (b, c) planes for one H/r tile.

    x_ref : (rows, Ho_t, r*W)       free view of the input planes
                                    x_ref[t, oy, dy*W + xx] == x[p, oy*r + dy, xx]
    s_ref : (r*Wc, r*Wc)            one-hot column-tile permutation
                                    s_ref[j, dx*Wc + oxl] == (j == oxl*r + dx)
    o_ref : (rows, r, r, Ho_t, Wo)  output planes, already in final channel order
    """
    r = ratio

    def one_plane(t, carry):
        for dy in range(r):                              # r is tiny (2..4): unrolled
            for c_out, wc in col_tiles:                  # static column tiles
                # Contiguous lane slice: all input columns ox*r+dx for
                # ox in [c_out, c_out+wc), of the rows with y % r == dy.
                c_in = dy * width + c_out * r
                chunk = x_ref[t, :, c_in:c_in + wc * r].astype(jnp.float32)
                for dx in range(r):
                    # Per-dx one-hot matmul; contraction length wc*r <= 128*r
                    # keeps the kernel HBM-bound, intermediate is only (Ho_t, wc).
                    pm = s_ref[0:wc * r, dx * wc_full:dx * wc_full + wc]
                    res = jnp.dot(chunk, pm,
                                  precision=lax.Precision.HIGHEST,
                                  preferred_element_type=jnp.float32)
                    o_ref[t, dy, dx, :, c_out:c_out + wc] = res.astype(o_ref.dtype)
        return carry

    lax.fori_loop(0, rows, one_plane, 0)


def _pick_h_tile(h_out, per_row_bytes, budget, max_h_tile=256):
    """Largest H/r tile (full dim or a multiple of 8) within the VMEM budget."""
    ht = h_out
    while ((ht * per_row_bytes > budget or ht > max_h_tile)
           and ht % 2 == 0 and (ht // 2) % 8 == 0):
        ht //= 2
    return ht


def _pick_rows(n_planes, slab_bytes, budget, min_plane_steps=8):
    """Largest divisor of n_planes that fits the budget and keeps >= ~8 grid steps."""
    cap = min(n_planes,
              max(1, budget // max(int(slab_bytes), 1)),
              max(1, n_planes // min_plane_steps))
    for t in range(int(cap), 0, -1):
        if n_planes % t == 0:
            return t
    return 1


def inv_pixel_shuffle_pallas(x, ratio=2):
    B, C, H, W = x.shape
    r = int(ratio)
    assert H % r == 0 and W % r == 0, "spatial dims must be divisible by ratio"
    assert jnp.issubdtype(x.dtype, jnp.floating), "float dtypes only (see TODO)"
    Ho, Wo = H // r, W // r
    BC = B * C
    isz = x.dtype.itemsize

    # Free (row-major) view: xv[p, oy, dy*W + xx] == x[b, c, oy*r + dy, xx]
    xv = x.reshape(BC, Ho, r * W)

    # Column tiling: caps the matmul contraction length at r*min(Wo, 128).
    wc_full = min(Wo, 128)
    bc_cols = wc_full * r
    n_full, rem = divmod(Wo, wc_full)
    col_tiles = tuple((k * wc_full, wc_full) for k in range(n_full))
    if rem:
        col_tiles += ((n_full * wc_full, rem),)

    # One-hot permutation for a single column tile (built once, host side):
    #   perm[j, dx*Wc + oxl] = 1  iff  j == oxl*r + dx
    jj = np.arange(bc_cols)[:, None]
    cc = np.arange(bc_cols)[None, :]
    perm = jnp.asarray((jj == (cc % wc_full) * r + (cc // wc_full)).astype(np.float32))

    # Tile sizes against a double-buffering-aware VMEM budget.
    budget = 12 << 20                       # pipeline buffers; safe under v7x's 64 MiB
    per_row_bytes = 4 * r * W * isz         # (input + output slab) x double buffer, per H/r row
    Ho_t = _pick_h_tile(Ho, per_row_bytes, budget)
    n_h = Ho // Ho_t
    slab_bytes = Ho_t * per_row_bytes
    rows = _pick_rows(BC, slab_bytes, budget)
    grid = (BC // rows, n_h)

    kernel = functools.partial(_inv_pixel_shuffle_kernel, ratio=r, width=W,
                               wc_full=wc_full, col_tiles=col_tiles, rows=rows)

    out5 = pl.pallas_call(
        kernel,
        out_shape=jax.ShapeDtypeStruct((BC, r, r, Ho, Wo), x.dtype),
        grid=grid,
        in_specs=[
            pl.BlockSpec((rows, Ho_t, r * W), lambda i, h: (i, h, 0)),
            pl.BlockSpec((bc_cols, bc_cols), lambda i, h: (0, 0)),
        ],
        out_specs=pl.BlockSpec((rows, r, r, Ho_t, Wo),
                               lambda i, h: (i, 0, 0, h, 0)),
        compiler_params=pltpu.CompilerParams(
            dimension_semantics=("parallel", "parallel"),
            vmem_limit_bytes=32 * 1024 * 1024,
        ),
    )(xv, perm)

    # Free reshape to the PyTorch output layout: channel = c*r*r + dy*r + dx.
    return out5.reshape(B, C * r * r, Ho, Wo)


class InvPixelShufflePallas:
    """Mirror of the PyTorch invPixelShuffle module."""

    def __init__(self, ratio=2):
        self.ratio = ratio

    def __call__(self, x):
        return inv_pixel_shuffle_pallas(x, self.ratio)

    forward = __call__


def inv_pixel_shuffle_ref(x, ratio):
    b, c, h, w = x.shape
    r = ratio
    return (x.reshape(b, c, h // r, r, w // r, r)
             .transpose(0, 1, 3, 5, 2, 4)
             .reshape(b, c * r * r, h // r, w // r))


if __name__ == "__main__":
    key = jax.random.PRNGKey(0)
    k1, k2 = jax.random.split(key)

    x = jax.random.normal(k1, (2, 4, 16, 16), jnp.float32)
    mod = InvPixelShufflePallas(ratio=2)
    out = jax.block_until_ready(mod(x))
    assert out.shape == (2, 4 * 2 * 2, 8, 8)
    np.testing.assert_allclose(np.asarray(out),
                               np.asarray(inv_pixel_shuffle_ref(x, 2)),
                               rtol=1e-5, atol=1e-6)

    # Second config: ratio=4, odd number of planes (exercises generality).
    x4 = jax.random.normal(k2, (2, 3, 16, 16), jnp.float32)
    out4 = jax.block_until_ready(inv_pixel_shuffle_pallas(x4, ratio=4))
    np.testing.assert_allclose(np.asarray(out4),
                               np.asarray(inv_pixel_shuffle_ref(x4, 4)),
                               rtol=1e-5, atol=1e-6)

    print("KERNEL_OK")
</pallas_src>

<mosaic_0001>
module attributes {stable_mosaic.version = 11 : i64} {
  func.func @_inv_pixel_shuffle_kernel(%arg0: i32, %arg1: i32, %arg2: memref<1x8x32xf32, #tpu.memory_space<vmem>>, %arg3: memref<16x16xf32, #tpu.memory_space<vmem>>, %arg4: memref<1x2x2x8x8xf32, #tpu.memory_space<vmem>>) attributes {dimension_semantics = [#tpu.dimension_semantics<parallel>, #tpu.dimension_semantics<parallel>], iteration_bounds = array<i64: 8, 1>, scalar_prefetch = 0 : i64, scratch_operands = 0 : i64, tpu.core_type = #tpu.core_type<tc>, window_params = [{transform_indices = @transform_0, window_bounds = array<i64: 1, 8, 32>}, {pipeline_mode = #tpu.pipeline_mode<synchronous>, transform_indices = @transform_1, window_bounds = array<i64: 16, 16>}, {transform_indices = @transform_2, window_bounds = array<i64: 1, 2, 2, 8, 8>}]} {
    %c0_i32 = arith.constant 0 : i32
    %0 = arith.index_cast %c0_i32 : i32 to index
    %c0 = arith.constant 0 : index
    %c0_0 = arith.constant 0 : index
    %1 = vector.load %arg2[%0, %c0, %c0_0] : memref<1x8x32xf32, #tpu.memory_space<vmem>>, vector<1x8x16xf32>
    %2 = vector.shape_cast %1 : vector<1x8x16xf32> to vector<8x16xf32>
    %c0_1 = arith.constant 0 : index
    %c0_2 = arith.constant 0 : index
    %3 = vector.load %arg3[%c0_1, %c0_2] : memref<16x16xf32, #tpu.memory_space<vmem>>, vector<16x8xf32>
    %cst = arith.constant dense<0.000000e+00> : vector<8x8xf32>
    %4 = tpu.matmul %2, %3, %cst {dimension_numbers = #tpu.dot_dimension_numbers<[1], [0], [0], [1], [0, 0, 1, 1], [], []>, precision = #tpu.contract_precision<fp32>} : vector<8x16xf32>, vector<16x8xf32>, vector<8x8xf32> -> vector<8x8xf32>
    %5 = arith.index_cast %c0_i32 : i32 to index
    %c0_3 = arith.constant 0 : index
    %c0_4 = arith.constant 0 : index
    %c0_5 = arith.constant 0 : index
    %c0_6 = arith.constant 0 : index
    %6 = vector.load %arg4[%5, %c0_3, %c0_4, %c0_5, %c0_6] : memref<1x2x2x8x8xf32, #tpu.memory_space<vmem>>, vector<1x1x1x8x8xf32>
    %7 = vector.shape_cast %6 : vector<1x1x1x8x8xf32> to vector<8x8xf32>
    %8 = vector.shape_cast %4 : vector<8x8xf32> to vector<1x1x1x8x8xf32>
    tpu.vector_store %arg4[%5, %c0_3, %c0_4, %c0_5, %c0_6], %8 {strides = array<i32>} : memref<1x2x2x8x8xf32, #tpu.memory_space<vmem>>, vector<1x1x1x8x8xf32>,
    %c0_7 = arith.constant 0 : index
    %c8 = arith.constant 8 : index
    %9 = vector.load %arg3[%c0_7, %c8] : memref<16x16xf32, #tpu.memory_space<vmem>>, vector<16x8xf32>
    %cst_8 = arith.constant dense<0.000000e+00> : vector<8x8xf32>
    %10 = tpu.matmul %2, %9, %cst_8 {dimension_numbers = #tpu.dot_dimension_numbers<[1], [0], [0], [1], [0, 0, 1, 1], [], []>, precision = #tpu.contract_precision<fp32>} : vector<8x16xf32>, vector<16x8xf32>, vector<8x8xf32> -> vector<8x8xf32>
    %11 = arith.index_cast %c0_i32 : i32 to index
    %c0_9 = arith.constant 0 : index
    %c1 = arith.constant 1 : index
    %c0_10 = arith.constant 0 : index
    %c0_11 = arith.constant 0 : index
    %12 = vector.load %arg4[%11, %c0_9, %c1, %c0_10, %c0_11] : memref<1x2x2x8x8xf32, #tpu.memory_space<vmem>>, vector<1x1x1x8x8xf32>
    %13 = vector.shape_cast %12 : vector<1x1x1x8x8xf32> to vector<8x8xf32>
    %14 = vector.shape_cast %10 : vector<8x8xf32> to vector<1x1x1x8x8xf32>
    tpu.vector_store %arg4[%11, %c0_9, %c1, %c0_10, %c0_11], %14 {strides = array<i32>} : memref<1x2x2x8x8xf32, #tpu.memory_space<vmem>>, vector<1x1x1x8x8xf32>,
    %15 = arith.index_cast %c0_i32 : i32 to index
    %c0_12 = arith.constant 0 : index
    %c16 = arith.constant 16 : index
    %16 = vector.load %arg2[%15, %c0_12, %c16] : memref<1x8x32xf32, #tpu.memory_space<vmem>>, vector<1x8x16xf32>
    %17 = vector.shape_cast %16 : vector<1x8x16xf32> to vector<8x16xf32>
    %c0_13 = arith.constant 0 : index
    %c0_14 = arith.constant 0 : index
    %18 = vector.load %arg3[%c0_13, %c0_14] : memref<16x16xf32, #tpu.memory_space<vmem>>, vector<16x8xf32>
    %cst_15 = arith.constant dense<0.000000e+00> : vector<8x8xf32>
    %19 = tpu.matmul %17, %18, %cst_15 {dimension_numbers = #tpu.dot_dimension_numbers<[1], [0], [0], [1], [0, 0, 1, 1], [], []>, precision = #tpu.contract_precision<fp32>} : vector<8x16xf32>, vector<16x8xf32>, vector<8x8xf32> -> vector<8x8xf32>
    %20 = arith.index_cast %c0_i32 : i32 to index
    %c1_16 = arith.constant 1 : index
    %c0_17 = arith.constant 0 : index
    %c0_18 = arith.constant 0 : index
    %c0_19 = arith.constant 0 : index
    %21 = vector.load %arg4[%20, %c1_16, %c0_17, %c0_18, %c0_19] : memref<1x2x2x8x8xf32, #tpu.memory_space<vmem>>, vector<1x1x1x8x8xf32>
    %22 = vector.shape_cast %21 : vector<1x1x1x8x8xf32> to vector<8x8xf32>
    %23 = vector.shape_cast %19 : vector<8x8xf32> to vector<1x1x1x8x8xf32>
    tpu.vector_store %arg4[%20, %c1_16, %c0_17, %c0_18, %c0_19], %23 {strides = array<i32>} : memref<1x2x2x8x8xf32, #tpu.memory_space<vmem>>, vector<1x1x1x8x8xf32>,
    %c0_20 = arith.constant 0 : index
    %c8_21 = arith.constant 8 : index
    %24 = vector.load %arg3[%c0_20, %c8_21] : memref<16x16xf32, #tpu.memory_space<vmem>>, vector<16x8xf32>
    %cst_22 = arith.constant dense<0.000000e+00> : vector<8x8xf32>
    %25 = tpu.matmul %17, %24, %cst_22 {dimension_numbers = #tpu.dot_dimension_numbers<[1], [0], [0], [1], [0, 0, 1, 1], [], []>, precision = #tpu.contract_precision<fp32>} : vector<8x16xf32>, vector<16x8xf32>, vector<8x8xf32> -> vector<8x8xf32>
    %26 = arith.index_cast %c0_i32 : i32 to index
    %c1_23 = arith.constant 1 : index
    %c1_24 = arith.constant 1 : index
    %c0_25 = arith.constant 0 : index
    %c0_26 = arith.constant 0 : index
    %27 = vector.load %arg4[%26, %c1_23, %c1_24, %c0_25, %c0_26] : memref<1x2x2x8x8xf32, #tpu.memory_space<vmem>>, vector<1x1x1x8x8xf32>
    %28 = vector.shape_cast %27 : vector<1x1x1x8x8xf32> to vector<8x8xf32>
    %29 = vector.shape_cast %25 : vector<8x8xf32> to vector<1x1x1x8x8xf32>
    tpu.vector_store %arg4[%26, %c1_23, %c1_24, %c0_25, %c0_26], %29 {strides = array<i32>} : memref<1x2x2x8x8xf32, #tpu.memory_space<vmem>>, vector<1x1x1x8x8xf32>,
    %c1_i32 = arith.constant 1 : i32
    return
  }
  func.func @transform_0(%arg0: i32, %arg1: i32) -> (i32, i32, i32) {
    %c0_i32 = arith.constant 0 : i32
    %c0_i32_0 = arith.constant 0 : i32
    return %arg0, %arg1, %c0_i32 : i32, i32, i32
  }
  func.func @transform_1(%arg0: i32, %arg1: i32) -> (i32, i32) {
    %c0_i32 = arith.constant 0 : i32
    %c0_i32_0 = arith.constant 0 : i32
    %c0_i32_1 = arith.constant 0 : i32
    return %c0_i32, %c0_i32_0 : i32, i32
  }
  func.func @transform_2(%arg0: i32, %arg1: i32) -> (i32, i32, i32, i32, i32) {
    %c0_i32 = arith.constant 0 : i32
    %c0_i32_0 = arith.constant 0 : i32
    %c0_i32_1 = arith.constant 0 : i32
    %c0_i32_2 = arith.constant 0 : i32
    return %arg0, %c0_i32, %c0_i32_0, %arg1, %c0_i32_1 : i32, i32, i32, i32, i32
  }
}

</mosaic_0001>

<bundles_post_ra>
// kernel: tpu_custom_call.1
= control target key start
LH: loop header
LB: loop body
LE: loop exit
PB: predicated region body
PF: predicated region fallthrough
CT: control target
= control target key end

     0   :  { %7 = vsyncpa [#allocation3], 0  ;;  %s3155_s0 = inlined_call_operand.hbm [shape: f32[8,8,32], index: 0, kind: input, shape index: {}]   ;;  %s3156_s1 = inlined_call_operand.hbm [shape: f32[16,16], index: 1, kind: input, shape index: {}]   ;;  %s3157_s2 = inlined_call_operand.hbm [shape: f32[8,2,2,8,8], index: 2, kind: output, shape index: {}]  }
   0x1   :  { %9 = vsyncpa [#allocation3 + $0x1], 0 }
   0x2   :  { %10 = vsyncpa [#allocation6], 0 }
   0x3   :  { %11 = vsyncpa [#allocation4], 0 }
   0x4   :  { %13 = vsyncpa [#allocation4 + $0x1], 0  ;;  %s2806_s9 = smov 0   ;;  %s2808_s10 = smov 0  }
   0x5   :  { %s2810_s11 = smov 0   ;;  %s2812_s12 = smov 0  }
   0x6   :  { %s2814_s13 = smov 0   ;;  %s2816_s14 = smov 0  }
   0x7 LB: > { %s2179_s15 = sadd.s32 4294967295, %s2777_s14   ;;  %s2180_s16 = sadd.s32 4294967294, %s2777_s14   ;;  %s2777_s14 = sphi %s2816_s14, %s19_s14   ;;  %s2773_s13 = sphi %s2814_s13, %s3180_s13   ;;  %s2769_s12 = sphi %s2812_s12, %s3179_s12   ;;  %s2765_s11 = sphi %s2810_s11, %s3178_s11   ;;  %s2761_s10 = sphi %s2808_s10, %s3177_s10   ;;  %s2757_s9 = sphi %s2806_s9, %s3176_s9  }
   0x8   : > { %p53_p0 = scmp.ne.s32.totalorder %s2761_s10, %s2757_s9  ;;  %p2840_p1 = scmp.eq.s32.totalorder %s2179_s15, 0 }
   0x9   : > { %p2844_p2 = scmp.eq.s32.totalorder %s2179_s15, 7  ;;  %p106_p3 = scmp.eq.s32.totalorder %s2180_s16, 7 }
   0xa   : > { %s3162_s17 = scalar_select %p2840_p1, 1, 0 }
   0xb   : > { %s3163_s18 = scalar_select %p2844_p2, 1, 0 }
   0xc   : > { %p2850_p4 = por %p2840_p1, %p53_p0  ;;  %p2181_p5 = scmp.ge.s32.totalorder %s2777_s14, 1 }
   0xd   : > { %p2855_p6 = por %p106_p3, %p53_p0  ;;  %p113_p7 = scmp.lt.s32.totalorder %s2777_s14, 9 }
   0xe   : > { %s3164_s19 = scalar_select %p2850_p4, 1, 0 }
   0xf   : > { %s3165_s20 = scalar_select %p2855_p6, 1, 0 }
  0x10   : > { %p2860_p8 = pnand %p2181_p5, %p113_p7  ;;  %s2779_s22 = smov [#allocation5]  }
  0x11   : > { %s125_s23 = sshll.u32 %s2779_s22, 4  ;;  %s31_s25 = sadd.s32 1, %s2773_s13  ;;  %s126_s23 = int_to_ptr.vmem [resolvable:$true] %s125_s23 }
  0x12   : > { %s3166_s21 = scalar_select %p2860_p8, 1, 0 }
  0x13   : > { %p2559_p9 = pneg %p2860_p8  ;;  %s2633_s28 = scalar_lea.hbm %s3156_s1, 256 }
  0x14   : > { %p2634_p11 = scmp.ne.s32.totalorder %s3156_s1, %s2633_s28  ;;  %p2640_p3 = scmp.lt.u32.totalorder %s2633_s28, %s3156_s1 }
  0x15   : > { %p2868_p10 = pnand %p2559_p9, %p2840_p1 }
  0x17   : > { %p2635_p12 = pneg %p2868_p10 }
  0x19   : > { %p2636_p13 = pnand %p2635_p12, %p2634_p11 }
  0x1b   : > { %p2637_p0 = pneg %p2636_p13 }
  0x1d   : > { %p2642_p5 = pnand %p2640_p3, %p2637_p0 }
  0x1f   : > { %2645 = shalt.err (!%p2642_p5)
}
  0x20   : > { %s2646_s5 = scalar_lea.vmem %s126_s23, 256  ;;  %p2654_p1 = scmp.lt.s32.totalorder %s126_s23, %s126_s23 }
  0x21   : > { %p2647_p7 = scmp.ne.s32.totalorder %s126_s23, %s2646_s5  ;;  %p2655_p4 = scmp.lt.s32.totalorder %s2646_s5, %s2646_s5 }
  0x23   : > { %p2649_p9 = pnand %p2647_p7, %p2635_p12  ;;  %p2656_p8 = por %p2655_p4, %p2654_p1 }
  0x25   : > { %p2650_p6 = pneg %p2649_p9 }
  0x27   : > { %p2657_p2 = pnand %p2656_p8, %p2650_p6 }
  0x29   : > { %2660 = shalt.err (!%p2657_p2)
}
  0x2a   : > { %s2780_s6 = smov 128   ;;  %s2781_s7 = smov 8  }
  0x2b   : > { %2562 = dma.hbm_to_vmem [thread:$0]  (!%p2868_p10), %s3156_s1, 256, %s126_s23, [#allocation6], %s2780_s6, %s2780_s6, %s2781_s7  }
  0x2c   : > { %p33_p1 = scmp.ge.s32.totalorder %s31_s25, 8  ;;  %s40_s16 = sadd.s32 1, %s2765_s11 }
  0x2d   : > { %p47_p2 = scmp.ne.s32.totalorder %s2765_s11, %s2761_s10  ;;  %p48_p4 = scmp.eq.s32.totalorder %s2777_s14, 0 }
  0x2e   : > { %s3182_s25 = smov (%p33_p1, %s31_s25), 0  ;;  %p3169_p8 = scmp.ne.s32.totalorder %s3163_s18, 0 }
  0x2f   : > { %p2895_p6 = por %p48_p4, %p47_p2  ;;  %s35_s24 = ssub.s32 %s2773_s13, %s3182_s25 }
  0x30   : > { %p2901_p11 = por %p3169_p8, %p47_p2  ;;  %p2572_p12 = scmp.lt.s32.totalorder %s2777_s14, 8 }
  0x31   : > { %p38_p10 = scmp.eq.s32.totalorder %s35_s24, 0  ;;  %s139_s23 = sand.u32 1, %s2765_s11  }
  0x32   : > { %s2184_s27 = sshll.u32 %s139_s23, 3  ;;  %s2185_s29 = sshll.u32 %s2773_s13, 7 }
  0x33   : > { %s2910_s28 = scalar_select %p38_p10, %s2765_s11, %s40_s16  }
  0x34   : > { %s2916_s4 = scalar_lea.hbm %s3155_s0, %s2185_s29  ;;  %s143_s18 = scalar_lea.vmem [#allocation2], %s2184_s27 }
  0x35   : > { %s151_s5 = sshll.u32 %s143_s18, 4  ;;  %p2922_p13 = pnand %p2572_p12, %p2895_p6  ;;  %s2918_s5 = int_to_ptr.vmem [resolvable:$true] %s151_s5 }
  0x36   : > { %s140_s7 = scalar_lea.sflag [#allocation3], %s139_s23  ;;  %s2661_s8 = scalar_lea.hbm %s2916_s4, 128 }
  0x37   : > { %p2662_p0 = scmp.ne.s32.totalorder %s2916_s4, %s2661_s8  ;;  %p2663_p3 = pneg %p2922_p13 }
  0x38   : > { %s2666_s24 = scalar_lea.hbm %s3155_s0, 1024  ;;  %p2667_p9 = scmp.lt.u32.totalorder %s2916_s4, %s3155_s0 }
  0x39   : > { %p2664_p5 = pnand %p2663_p3, %p2662_p0  ;;  %p2668_p1 = scmp.lt.u32.totalorder %s2666_s24, %s2661_s8 }
  0x3a   : > { %p2670_p4 = scmp.lt.u32.totalorder %s2661_s8, %s2916_s4 }
  0x3b   : > { %p2665_p7 = pneg %p2664_p5  ;;  %p2669_p2 = por %p2668_p1, %p2667_p9 }
  0x3d   : > { %p2671_p6 = por %p2670_p4, %p2669_p2 }
  0x3f   : > { %p2672_p8 = pnand %p2671_p6, %p2665_p7 }
  0x41   : > { %2675 = shalt.err (!%p2672_p8)
}
  0x42   : > { %s2676_s23 = scalar_lea.vmem %s2918_s5, 128  ;;  %s2782_s29 = smov [#allocation2]  }
  0x43   : > { %p2677_p12 = scmp.ne.s32.totalorder %s2918_s5, %s2676_s23  ;;  %s2681_s30 = sshll.u32 %s2782_s29, 4  ;;  %s2682_s30 = int_to_ptr.vmem [resolvable:$false] %s2681_s30 }
  0x44   : > { %s2683_s3 = scalar_lea.vmem %s2682_s30, 256  ;;  %p2684_p5 = scmp.lt.s32.totalorder %s2918_s5, %s2682_s30 }
  0x45   : > { %p2679_p10 = pnand %p2677_p12, %p2663_p3  ;;  %p2685_p9 = scmp.lt.s32.totalorder %s2683_s3, %s2676_s23 }
  0x47   : > { %p2680_p0 = pneg %p2679_p10  ;;  %p2686_p1 = por %p2685_p9, %p2684_p5 }
  0x49   : > { %p2687_p2 = pnand %p2686_p1, %p2680_p0 }
  0x4b   : > { %2690 = shalt.err (!%p2687_p2)
}
  0x4c   : > { %2566 = dma.hbm_to_vmem [thread:$0]  (!%p2922_p13), %s2916_s4, 128, %s2918_s5, %s140_s7  }
  0x4d   : > { %p3172_p7 = scmp.ne.s32.totalorder %s3166_s21, 0 }
  0x4e   : > { %s2954_s18 = sand.u32 (!%p3172_p7), 1, %s2761_s10   ;;  %p3173_p3 = scmp.ne.s32.totalorder (!%p3172_p7), %s3164_s19, 0 }
  0x4f   : > { %160 = sbr.rel (%p3172_p7) target bundleno = 530 (0x212), region = 28  ;;  %s2187_s8 = sshll.u32 (!%p3172_p7), %s2954_s18, 3 }
  0x50   : > { %s163_s15 = scalar_lea.sflag (!%p3172_p7), [#allocation3], %s2954_s18  ;;  %s166_s16 = scalar_lea.vmem (!%p3172_p7), [#allocation2], %s2187_s8 }
  0x56   : > { %2744 = dma.done.wait (%p3173_p3), %s163_s15, 128  }
  0x57   : > { %2746 = vsyncadd (%p3173_p3), %s163_s15, 4294967168  ;;  %p3174_p4 = scmp.ne.s32.totalorder %s3162_s17, 0 }
  0x59   : > { %2748 = dma.done.wait (%p3174_p4), [#allocation6], 256  }
  0x5a   : > { %2750 = vsyncadd (%p3174_p4), [#allocation6], 4294967040  ;;  %v2783_v0 = vmov 0.0|0.0   ;;  %vm2784_vm0 = vmmov 0   ;;  %v2785_v1 = vmov 0.0   ;;  %vm194_vm1 = vcmask 130048  }
  0x5b   : > { %2439 = vmatprep.subr.bf16.mxu0 %v2783_v0  ;;  %2457 = vmatprep.subr.bf16.mxu1 %v2783_v0  ;;  %v1130_v2 = vld [vmem:[%s166_s16] sm:$0xff]  ;;  %v659_v3 = vld [vmem:[#allocation5] sm:$0xff]  ;;  %v660_v4 = vld [vmem:[#allocation5 + $0x8] sm:$0xff]  ;;  %s2786_s19 = smov 112   ;;  %s2787_s17 = smov 120   ;;  %vm657_vm2 = vcmask 64512  }
  0x5c   : > { %2275 = vmatprep.mubr.msk.f32.mxu0 %vm2784_vm0, %v2785_v1  ;;  %2317 = vmatprep.mubr.msk.f32.mxu1 %vm2784_vm0, %v2785_v1  ;;  %v199_v5 = vand.u32 4294901760, %v659_v3  ;;  %v202_v6 = vand.u32 4294901760, %v660_v4  ;;  %v196_v7 = vsel %vm194_vm1, %v1130_v2, 0  ;;  %s2189_s21 = sshll.u32 %s2954_s18, 5  ;;  %s2198_s6 = sshll.u32 %s2769_s12, 9 }
  0x5d   : > { %1134 = vrot.lane.b32.xlu1 %v1130_v2, %s2786_s19  ;;  %663 = vrot.lane.b32.xlu0 %v659_v3, %s2787_s17  ;;  %v2973_v8 = vand.u32 4294901760, %v196_v7  ;;  %s190_s4 = scalar_lea.vmem [#allocation7], %s2189_s21  ;;  %s3106_s22 = scalar_lea.hbm %s3157_s2, %s2198_s6 }
  0x5e   : > { %v2975_v9 = vpack.c.bf16 %v202_v6, %v199_v5  ;;  %v277_v10 = vsub.f32 %v659_v3, %v199_v5  ;;  %v284_v11 = vsub.f32 %v660_v4, %v202_v6  ;;  %s2085_s5 = sshll.u32 %s190_s4, 4  ;;  %s2071_s27 = scalar_lea.sflag [#allocation4], %s2954_s18  ;;  %s3101_s5 = int_to_ptr.vmem [resolvable:$true] %s2085_s5 }
  0x5f   : > { %v2978_v12 = vsub.f32 %v196_v7, %v2973_v8  ;;  %s2691_s23 = scalar_lea.vmem %s3101_s5, 512  ;;  %s2788_s12 = smov [#allocation7]  }
  0x60   : > { %v278_v13 = vand.u32 4294901760, %v277_v10  ;;  %v285_v14 = vand.u32 4294901760, %v284_v11  ;;  %2441 = vmatpush3.bf16.msra.mxu0 %v2975_v9  ;;  %v2446_v23 = vpack.c.bf16 %v284_v11, %v277_v10  ;;  %p2692_p13 = scmp.ne.s32.totalorder %s3101_s5, %s2691_s23  ;;  %s2695_s29 = sshll.u32 %s2788_s12, 4  ;;  %s2696_s29 = int_to_ptr.vmem [resolvable:$false] %s2695_s29 }
  0x61   : > { %665 = vrot.lane.b32.xlu0 %v660_v4, %s2787_s17  ;;  %1603 = vrot.lane.b32.xlu1 %v659_v3, %s2787_s17  ;;  %v2982_v15 = vand.u32 4294901760, %v2978_v12  ;;  %s2697_s30 = scalar_lea.vmem %s2696_s29, 1024  ;;  %p2698_p12 = scmp.lt.s32.totalorder %s3101_s5, %s2696_s29 }
  0x62   : > { %2442 = vmatprep.subr.bf16.mxu0 %v2783_v0  ;;  %v279_v16 = vsub.f32 %v277_v10, %v278_v13  ;;  %v286_v17 = vsub.f32 %v284_v11, %v285_v14  ;;  %v2999_v24 = vpack.c.bf16 %v285_v14, %v278_v13  ;;  %p2693_p6 = pnand %p2692_p13, %p2901_p11  ;;  %p2699_p10 = scmp.lt.s32.totalorder %s2697_s30, %s2691_s23 }
  0x63   : > { %v268_v18 = vsub.f32 %v2978_v12, %v2982_v15 }
  0x64   : > { %v280_v19 = vand.u32 4294901760, %v279_v16  ;;  %v287_v20 = vand.u32 4294901760, %v286_v17  ;;  %p2694_p8 = pneg %p2693_p6  ;;  %p2700_p0 = por %p2699_p10, %p2698_p12 }
  0x65   : > { %1605 = vrot.lane.b32.xlu0 %v660_v4, %s2787_s17  ;;  %v269_v21 = vand.u32 4294901760, %v268_v18 }
  0x66   : > { %v2443_v22 = vpack.c.bf16 %v287_v20, %v280_v19  ;;  %p2701_p5 = pnand %p2700_p0, %p2694_p8 }
  0x67   : > { %2276 = vmatmul.mubr.f32.vlgmr.msra.gmra.mrb[0].mxu0 %v269_v21 }
  0x68   : > { %2444 = vmatpush3.bf16.msra.mxu0 %v2443_v22  ;;  %2282 = vmatprep.mubr.msk.f32.mxu0 %vm2784_vm0, %v2785_v1 }
  0x69   : > { %2445 = vmatprep.subr.bf16.mxu0 %v2783_v0 }
  0x6f   : > { %2283 = vmatmul.mubr.f32.vlgmr.msra.gmra.mrb[0].mxu0 %v2973_v8 }
  0x70   : > { %2447 = vmatpush3.bf16.msra.mxu0 %v2446_v23  ;;  %2289 = vmatprep.mubr.msk.f32.mxu0 %vm2784_vm0, %v2785_v1 }
  0x71   : > { %2448 = vmatprep.subr.bf16.mxu0 %v2783_v0 }
  0x77   : > { %2290 = vmatmul.mubr.f32.vlgmr.msra.gmra.mrb[0].mxu0 %v2978_v12 }
  0x78   : > { %2450 = vmatpush3.bf16.msra.mxu0 %v2975_v9  ;;  %2296 = vmatprep.mubr.msk.f32.mxu0 %vm2784_vm0, %v2785_v1 }
  0x79   : > { %2451 = vmatprep.subr.bf16.mxu0 %v2783_v0 }
  0x7f   : > { %2297 = vmatmul.mubr.f32.vlgmr.msra.gmra.mrb[0].mxu0 %v2982_v15 }
  0x80   : > { %2453 = vmatpush3.bf16.msra.mxu0 %v2999_v24  ;;  %2303 = vmatprep.mubr.msk.f32.mxu0 %vm2784_vm0, %v2785_v1 }
  0x81   : > { %2454 = vmatprep.subr.bf16.mxu0 %v2783_v0 }
  0x87   : > { %2304 = vmatmul.mubr.f32.vlgmr.msra.gmra.mrb[0].mxu0 %v2973_v8 }
  0x88   : > { %2456 = vmatpush3.bf16.msra.mxu0 %v2975_v9  ;;  %2310 = vmatprep.mubr.msk.f32.mxu0 %vm2784_vm0, %v2785_v1 }
  0x89   : > { %2475 = vmatprep.subr.bf16.mxu0 %v2783_v0 }
  0x8f   : > { %2311 = vmatmul.mubr.f32.vlgmr.msra.gmra.mrb[0].mxu0 %v2973_v8 }
  0x90   : > { %2477 = vmatpush3.bf16.msra.mxu0 %v2975_v9  ;;  %2359 = vmatprep.mubr.msk.f32.mxu0 %vm2784_vm0, %v2785_v1 }
  0x91   : > { %2478 = vmatprep.subr.bf16.mxu0 %v2783_v0 }
  0xcf   : > { %v1135_v25 = vpop.permute.xlu1 %1134  ;;  %v664_v26 = vpop.permute.xlu0 %663 }
  0xd0   : > { %v1136_v27 = vsel %vm194_vm1, %v1135_v25, 0  ;;  %v670_v28 = vand.u32 4294901760, %v664_v26 }
  0xd1   : > { %v3017_v29 = vand.u32 4294901760, %v1136_v27 }
  0xd2   : > { %v748_v30 = vsub.f32 %v664_v26, %v670_v28 }
  0xd3   : > { %v3020_v31 = vsub.f32 %v1136_v27, %v3017_v29  ;;  %v666_v32 = vpop.permute.xlu0 %665  ;;  %v1604_v47 = vpop.permute.xlu1 %1603 }
  0xd4   : > { %v749_v33 = vand.u32 4294901760, %v748_v30  ;;  %v673_v34 = vand.u32 4294901760, %v666_v32  ;;  %v1610_v49 = vand.u32 4294901760, %v1604_v47 }
  0xd5   : > { %v3023_v35 = vand.u32 4294901760, %v3020_v31 }
  0xd6   : > { %v2458_v36 = vpack.c.bf16 %v673_v34, %v670_v28  ;;  %v755_v37 = vsub.f32 %v666_v32, %v673_v34  ;;  %v750_v39 = vsub.f32 %v748_v30, %v749_v33  ;;  %v1688_v52 = vsub.f32 %v1604_v47, %v1610_v49 }
  0xd7   : > { %v1208_v38 = vsub.f32 %v3020_v31, %v3023_v35  ;;  %v1606_v48 = vpop.permute.xlu0 %1605 }
  0xd8   : > { %v756_v40 = vand.u32 4294901760, %v755_v37  ;;  %2459 = vmatpush3.bf16.msra.mxu1 %v2458_v36  ;;  %v751_v43 = vand.u32 4294901760, %v750_v39  ;;  %v2464_v46 = vpack.c.bf16 %v755_v37, %v748_v30  ;;  %v1613_v50 = vand.u32 4294901760, %v1606_v48 }
  0xd9   : > { %v3027_v41 = vand.u32 4294901760, %v1208_v38  ;;  %2460 = vmatprep.subr.bf16.mxu1 %v2783_v0  ;;  %v1689_v54 = vand.u32 4294901760, %v1688_v52 }
  0xda   : > { %v757_v42 = vsub.f32 %v755_v37, %v756_v40  ;;  %v2470_v51 = vpack.c.bf16 %v756_v40, %v749_v33  ;;  %v1695_v53 = vsub.f32 %v1606_v48, %v1613_v50  ;;  %v2494_v59 = vpack.c.bf16 %v1613_v50, %v1610_v49 }
  0xdb   : > { %2318 = vmatmul.mubr.f32.vlgmr.msra.gmra.mrb[0].mxu1 %v269_v21  ;;  %2360 = vmatmul.mubr.f32.vlgmr.msra.gmra.mrb[2].mxu0 %v3027_v41  ;;  %v1690_v56 = vsub.f32 %v1688_v52, %v1689_v54 }
  0xdc   : > { %v758_v44 = vand.u32 4294901760, %v757_v42  ;;  %2480 = vmatpush3.bf16.msra.mxu0 %v2443_v22  ;;  %2324 = vmatprep.mubr.msk.f32.mxu1 %vm2784_vm0, %v2785_v1  ;;  %v1696_v55 = vand.u32 4294901760, %v1695_v53  ;;  %v2500_v62 = vpack.c.bf16 %v1695_v53, %v1688_v52 }
  0xdd   : > { %2366 = vmatprep.mubr.msk.f32.mxu0 %vm2784_vm0, %v2785_v1  ;;  %2481 = vmatprep.subr.bf16.mxu0 %v2783_v0  ;;  %v1691_v58 = vand.u32 4294901760, %v1690_v56 }
  0xde   : > { %v2461_v45 = vpack.c.bf16 %v758_v44, %v751_v43  ;;  %v1697_v57 = vsub.f32 %v1695_v53, %v1696_v55  ;;  %v2506_v63 = vpack.c.bf16 %v1696_v55, %v1689_v54 }
  0xe0   : > { %2462 = vmatpush3.bf16.msra.mxu1 %v2461_v45  ;;  %v1698_v60 = vand.u32 4294901760, %v1697_v57 }
  0xe1   : > { %2463 = vmatprep.subr.bf16.mxu1 %v2783_v0 }
  0xe2   : > { %v2497_v61 = vpack.c.bf16 %v1698_v60, %v1691_v58 }
  0xe3   : > { %2325 = vmatmul.mubr.f32.vlgmr.msra.gmra.mrb[0].mxu1 %v2973_v8  ;;  %2367 = vmatmul.mubr.f32.vlgmr.msra.gmra.mrb[2].mxu0 %v3017_v29 }
  0xe4   : > { %2465 = vmatpush3.bf16.msra.mxu1 %v2464_v46  ;;  %2483 = vmatpush3.bf16.msra.mxu0 %v2446_v23 }
  0xe5   : > { %2331 = vmatprep.mubr.msk.f32.mxu1 %vm2784_vm0, %v2785_v1  ;;  %2466 = vmatprep.subr.bf16.mxu1 %v2783_v0 }
  0xe6   : > { %2373 = vmatprep.mubr.msk.f32.mxu0 %vm2784_vm0, %v2785_v1  ;;  %2484 = vmatprep.subr.bf16.mxu0 %v2783_v0 }
  0xeb   : > { %2332 = vmatmul.mubr.f32.vlgmr.msra.gmra.mrb[0].mxu1 %v2978_v12  ;;  %2374 = vmatmul.mubr.f32.vlgmr.msra.gmra.mrb[2].mxu0 %v3020_v31 }
  0xec   : > { %2468 = vmatpush3.bf16.msra.mxu1 %v2458_v36  ;;  %2486 = vmatpush3.bf16.msra.mxu0 %v2975_v9 }
  0xed   : > { %2338 = vmatprep.mubr.msk.f32.mxu1 %vm2784_vm0, %v2785_v1  ;;  %2469 = vmatprep.subr.bf16.mxu1 %v2783_v0 }
  0xee   : > { %2380 = vmatprep.mubr.msk.f32.mxu0 %vm2784_vm0, %v2785_v1  ;;  %2487 = vmatprep.subr.bf16.mxu0 %v2783_v0 }
  0xf3   : > { %2339 = vmatmul.mubr.f32.vlgmr.msra.gmra.mrb[0].mxu1 %v2982_v15  ;;  %2381 = vmatmul.mubr.f32.vlgmr.msra.gmra.mrb[2].mxu0 %v3023_v35 }
  0xf4   : > { %2471 = vmatpush3.bf16.msra.mxu1 %v2470_v51  ;;  %2489 = vmatpush3.bf16.msra.mxu0 %v2999_v24 }
  0xf5   : > { %2345 = vmatprep.mubr.msk.f32.mxu1 %vm2784_vm0, %v2785_v1  ;;  %2472 = vmatprep.subr.bf16.mxu1 %v2783_v0 }
  0xf6   : > { %2387 = vmatprep.mubr.msk.f32.mxu0 %vm2784_vm0, %v2785_v1  ;;  %2490 = vmatprep.subr.bf16.mxu0 %v2783_v0 }
  0xfb   : > { %2346 = vmatmul.mubr.f32.vlgmr.msra.gmra.mrb[0].mxu1 %v2973_v8  ;;  %2388 = vmatmul.mubr.f32.vlgmr.msra.gmra.mrb[2].mxu0 %v3017_v29 }
  0xfc   : > { %2474 = vmatpush3.bf16.msra.mxu1 %v2458_v36  ;;  %2492 = vmatpush3.bf16.msra.mxu0 %v2975_v9 }
  0xfd   : > { %2352 = vmatprep.mubr.msk.f32.mxu1 %vm2784_vm0, %v2785_v1  ;;  %2394 = vmatprep.mubr.msk.f32.mxu0 %vm2784_vm0, %v2785_v1 }
  0xfe   : > { %2493 = vmatprep.subr.bf16.mxu1 %v2783_v0 }
 0x103   : > { %2353 = vmatmul.mubr.f32.vlgmr.msra.gmra.mrb[0].mxu1 %v2973_v8  ;;  %2395 = vmatmul.mubr.f32.vlgmr.msra.gmra.mrb[2].mxu0 %v3017_v29 }
 0x104   : > { %2495 = vmatpush3.bf16.msra.mxu1 %v2494_v59  ;;  %2401 = vmatprep.mubr.msk.f32.mxu1 %vm2784_vm0, %v2785_v1 }
 0x105   : > { %2496 = vmatprep.subr.bf16.mxu1 %v2783_v0 }
 0x107   : > { %2402 = vmatmul.mubr.f32.vlgmr.msra.gmra.mrb[2].mxu1 %v3027_v41 }
 0x108   : > { %2498 = vmatpush3.bf16.msra.mxu1 %v2497_v61  ;;  %2408 = vmatprep.mubr.msk.f32.mxu1 %vm2784_vm0, %v2785_v1 }
 0x109   : > { %2499 = vmatprep.subr.bf16.mxu1 %v2783_v0 }
 0x10f   : > { %2409 = vmatmul.mubr.f32.vlgmr.msra.gmra.mrb[2].mxu1 %v3017_v29 }
 0x110   : > { %2501 = vmatpush3.bf16.msra.mxu1 %v2500_v62  ;;  %2415 = vmatprep.mubr.msk.f32.mxu1 %vm2784_vm0, %v2785_v1 }
 0x111   : > { %2502 = vmatprep.subr.bf16.mxu1 %v2783_v0 }
 0x117   : > { %2416 = vmatmul.mubr.f32.vlgmr.msra.gmra.mrb[2].mxu1 %v3020_v31 }
 0x118   : > { %2504 = vmatpush3.bf16.msra.mxu1 %v2494_v59  ;;  %2422 = vmatprep.mubr.msk.f32.mxu1 %vm2784_vm0, %v2785_v1 }
 0x119   : > { %2505 = vmatprep.subr.bf16.mxu1 %v2783_v0 }
 0x11f   : > { %2423 = vmatmul.mubr.f32.vlgmr.msra.gmra.mrb[2].mxu1 %v3023_v35 }
 0x120   : > { %2507 = vmatpush3.bf16.msra.mxu1 %v2506_v63  ;;  %2429 = vmatprep.mubr.msk.f32.mxu1 %vm2784_vm0, %v2785_v1 }
 0x121   : > { %2508 = vmatprep.subr.bf16.mxu1 %v2783_v0 }
 0x127   : > { %2430 = vmatmul.mubr.f32.vlgmr.msra.gmra.mrb[2].mxu1 %v3017_v29 }
 0x128   : > { %2510 = vmatpush3.bf16.msra.mxu1 %v2494_v59  ;;  %2436 = vmatprep.mubr.msk.f32.mxu1 %vm2784_vm0, %v2785_v1 }
 0x12f   : > { %2437 = vmatmul.mubr.f32.vlgmr.msra.gmra.mrb[2].mxu1 %v3017_v29 }
 0x162   : > { %v653_v2 = vpop.f32.mrb[0].mxu0 }
 0x163   : > { %658 = vst.msk [vmem:[%s190_s4] sm:$0xff] %vm657_vm2, %v653_v2  ;;  %v2312_v3 = vpop.f32.mrb[1].mxu0 }
 0x1d6   : > { %v1124_v4 = vpop.f32.mrb[0].mxu1  ;;  %v1593_v0 = vpop.f32.mrb[2].mxu0 }
 0x1d7   : > { %2190 = vst.msk [vmem:[%s190_s4 + $0x8] sm:$0xff] %vm657_vm2, %v1124_v4  ;;  %2191 = vst.msk [vmem:[%s190_s4 + $0x10] sm:$0xff] %vm657_vm2, %v1593_v0  ;;  %v2354_v5 = vpop.f32.mrb[1].mxu1  ;;  %v2396_v6 = vpop.f32.mrb[3].mxu0 }
 0x202   : > { %v2064_v1 = vpop.f32.mrb[2].mxu1 }
 0x203   : > { %2192 = vst.msk [vmem:[%s190_s4 + $0x18] sm:$0xff] %vm657_vm2, %v2064_v1  ;;  %v2438_v7 = vpop.f32.mrb[3].mxu1 }
 0x204   : > { %2704 = shalt.err (!%p2701_p5)
}
 0x205   : > { %s2705_s3 = scalar_lea.hbm %s3106_s22, 512  ;;  %s2709_s16 = scalar_lea.hbm %s3157_s2, 4096 }
 0x206   : > { %p2706_p9 = scmp.ne.s32.totalorder %s3106_s22, %s2705_s3  ;;  %p2710_p7 = scmp.lt.u32.totalorder %s3106_s22, %s3157_s2 }
 0x207   : > { %p2711_p3 = scmp.lt.u32.totalorder %s2709_s16, %s2705_s3  ;;  %p2713_p13 = scmp.lt.u32.totalorder %s2705_s3, %s3106_s22 }
 0x208   : > { %p2707_p1 = pnand %p2706_p9, %p2901_p11 }
 0x209   : > { %p2712_p4 = por %p2711_p3, %p2710_p7 }
 0x20a   : > { %p2708_p2 = pneg %p2707_p1 }
 0x20b   : > { %p2714_p6 = por %p2713_p13, %p2712_p4 }
 0x20d   : > { %p2715_p8 = pnand %p2714_p6, %p2708_p2 }
 0x20f   : > { %2718 = shalt.err (!%p2715_p8)
}
 0x210   : > { %s2789_s21 = smov 128   ;;  %s2790_s4 = smov 8  }
 0x211   : > { %2557 = dma.vmem_to_hbm [thread:$0]  (%p2901_p11), %s3101_s5, 512, %s3106_s22, %s2071_s27, %s2789_s21, %s2789_s21, %s2790_s4  }
 0x212 PF: > { %p2574_p12 = scmp.ge.s32.totalorder %s2777_s14, 2  ;;  %s2100_s6 = sand.u32 1, %s2757_s9  }
 0x213   : > { %p3175_p10 = scmp.ne.s32.totalorder %s3165_s20, 0  ;;  %s2101_s7 = scalar_lea.sflag [#allocation4], %s2100_s6 }
 0x215   : > { %p2568_p0 = pnand %p2574_p12, %p3175_p10 }
 0x217   : > { %2752 = dma.done.wait (!%p2568_p0), %s2101_s7, 512  }
 0x218   : > { %2754 = vsyncadd (!%p2568_p0), %s2101_s7, 4294966784  ;;  %s19_s14 = sadd.s32 1, %s2777_s14   ;;  %s3176_s9 = smov %s2761_s10 }
 0x219   : > { %p16_p5 = scmp.ge.s32.totalorder %s19_s14, 10   ;;  %s3177_s10 = smov %s2765_s11 }
 0x21a   : > { %s3178_s11 = smov %s2910_s28  ;;  %s3179_s12 = smov %s2773_s13 }
 0x21b   : > { %s3180_s13 = smov %s3182_s25  ;;  %18 = sbr.rel (!%p16_p5) target bundleno = 7 (0x7), region = 80 }
 0x222   :  { %2106 = vsyncpa [#allocation3], 1 }
 0x223   :  { %2108 = vsyncpa [#allocation3 + $0x1], 1 }
 0x224   :  { %2109 = vsyncpa [#allocation6], 1 }
 0x225   :  { %2110 = vsyncpa [#allocation4], 1 }
 0x226   :  { %2112 = vsyncpa [#allocation4 + $0x1], 1 }

</bundles_post_ra>
